<compile_context>
chip_gen: v7x
topology: tpu7x:2x2x1
jax: 0.10.0
libtpu: 0.0.40
codegen_flags: <defaults>
</compile_context>

<pallas_src>
import functools

import jax
import jax.numpy as jnp
from jax.experimental import pallas as pl
from jax.experimental.pallas import tpu as pltpu

_LANE = 128
_VMEM_BUDGET = 24 * 1024 * 1024     # target pipelined VMEM footprint (bytes)
_VMEM_LIMIT = 32 * 1024 * 1024      # scoped-VMEM request (fits v5e/v6e/v7x)


def _round_up(x: int, m: int) -> int:
    return (x + m - 1) // m * m


def _largest_tile(dim: int, align: int, cap: int) -> int:
    """Largest t <= cap with t % align == 0 and dim % t == 0 (dim % align == 0)."""
    if dim <= cap:
        return dim
    t = (cap // align) * align
    while t > align:
        if dim % t == 0:
            return t
        t -= align
    return align


def _footprint(tm: int, tn: int, tk: int, in_size: int, out_size: int) -> int:
    """Upper bound on the pipelined VMEM footprint (bytes)."""
    w_bufs = 3 if tm <= 64 else 2
    return (2 * tm * tk * in_size          # x (double buffered)
            + w_bufs * tk * tn * in_size   # w stream
            + 2 * tn * 4                   # bias
            + 2 * tm * tn * out_size       # output tile
            + tm * tn * 4)                 # (possible) f32 accumulator scratch


# ---------------------------------------------------------------------------
# Kernels
# ---------------------------------------------------------------------------
def _kernel_single_k(x_ref, w_ref, b_ref, o_ref):
    """Whole reduction in one grid step: matmul + bias + ReLU, one store."""
    acc = jnp.dot(x_ref[...], w_ref[...], preferred_element_type=jnp.float32)
    o_ref[...] = jnp.maximum(acc + b_ref[...], 0.0).astype(o_ref.dtype)


def _kernel_multi_k_inplace(x_ref, w_ref, b_ref, o_ref):
    """K-tiled reduction accumulating directly into the (f32) output block."""
    k = pl.program_id(2)

    @pl.when(k == 0)
    def _init():
        o_ref[...] = jnp.zeros_like(o_ref)

    o_ref[...] += jnp.dot(x_ref[...], w_ref[...],
                          preferred_element_type=jnp.float32)

    @pl.when(k == pl.num_programs(2) - 1)
    def _finalize():
        o_ref[...] = jnp.maximum(o_ref[...] + b_ref[...], 0.0)


def _kernel_multi_k_scratch(x_ref, w_ref, b_ref, o_ref, acc_ref):
    """K-tiled reduction with an f32 scratch accumulator (non-f32 outputs)."""
    k = pl.program_id(2)

    @pl.when(k == 0)
    def _init():
        acc_ref[...] = jnp.zeros_like(acc_ref)

    acc_ref[...] += jnp.dot(x_ref[...], w_ref[...],
                            preferred_element_type=jnp.float32)

    @pl.when(k == pl.num_programs(2) - 1)
    def _finalize():
        o_ref[...] = jnp.maximum(acc_ref[...] + b_ref[...], 0.0).astype(o_ref.dtype)


# ---------------------------------------------------------------------------
# Wrapper
# ---------------------------------------------------------------------------
@functools.partial(
    jax.jit, static_argnames=("compute_dtype", "out_dtype", "tm", "tn", "tk"))
def bridge_layer(x, w, b, *, compute_dtype="auto", out_dtype=None,
                 tm=None, tn=None, tk=None):
    """y = relu(x @ w + b)

    x: (M, K)   w: (K, N)  (PyTorch weight, pre-transposed)   b: (N,)
    compute_dtype: dtype of x/w fed to the MXU.  "auto" -> bf16 on large layers,
                   None -> keep input dtype.  Accumulation is always f32.
    out_dtype: output dtype (default: x.dtype).
    tm/tn/tk: optional tile-size caps.
    """
    M, K = x.shape
    Kw, N = w.shape
    assert K == Kw and b.shape == (N,)

    out_dtype = jnp.dtype(out_dtype if out_dtype is not None else x.dtype)
    if compute_dtype == "auto":
        # bf16 halves the dominant streamed-weight HBM traffic on big layers.
        compute_dtype = (jnp.bfloat16
                         if (x.dtype == jnp.float32 and K * N >= (1 << 20))
                         else None)
    cdtype = jnp.dtype(compute_dtype if compute_dtype is not None else x.dtype)

    in_size = cdtype.itemsize
    out_size = out_dtype.itemsize
    m_align = 16 if in_size <= 2 else 8     # bf16 packs 16 rows per vreg

    # Pad only to hardware alignment, never to tile multiples.
    Mp = _round_up(M, m_align)
    Kp = _round_up(K, _LANE)
    Np = _round_up(N, _LANE)

    # Tiles: divisors of the aligned dims.
    tm = _largest_tile(Mp, m_align, tm or 256)
    tn = _largest_tile(Np, _LANE, tn or 1024)
    tk = _largest_tile(Kp, _LANE, tk or 2048)

    # v7x megacore: give the two TensorCores at least 2 parallel output blocks.
    if (Mp // tm) * (Np // tn) == 1:
        if Np >= 2 * _LANE:
            tn = _largest_tile(Np, _LANE, Np // 2)
        elif Mp >= 2 * m_align:
            tm = _largest_tile(Mp, m_align, Mp // 2)

    # Shrink tiles until the pipelined footprint fits the VMEM budget.
    while _footprint(tm, tn, tk, in_size, out_size) > _VMEM_BUDGET:
        if tk >= tn and tk > _LANE:
            tk = _largest_tile(Kp, _LANE, tk // 2)
        elif tn > _LANE:
            tn = _largest_tile(Np, _LANE, tn // 2)
        elif tm > m_align:
            tm = _largest_tile(Mp, m_align, tm // 2)
        else:
            break

    grid_m, grid_n, grid_k = Mp // tm, Np // tn, Kp // tk
    multi_k = grid_k > 1

    # Cast / pad only when actually required (no extra HBM round trips).
    # TODO(synk): in a real model, pre-transpose/pad/cast w and b once at init.
    xc = x if x.dtype == cdtype else x.astype(cdtype)
    wc = w if w.dtype == cdtype else w.astype(cdtype)
    if (Mp, Kp) != (M, K):
        xc = jnp.pad(xc, ((0, Mp - M), (0, Kp - K)))
    if (Kp, Np) != (K, N):
        wc = jnp.pad(wc, ((0, Kp - K), (0, Np - N)))
    bc = b.astype(jnp.float32).reshape(1, N)
    if Np != N:
        bc = jnp.pad(bc, ((0, 0), (0, Np - N)))

    # Deeper buffering on the dominant w stream for thin-batch shapes.
    n_w_blocks = grid_n * (grid_k if multi_k else 1)
    w_bufs = 3 if (tm <= 64 and n_w_blocks >= 3) else 2

    def _w_spec(index_map):
        if w_bufs > 2:
            return pl.BlockSpec((tk, tn), index_map,
                                pipeline_mode=pl.Buffered(w_bufs))
        return pl.BlockSpec((tk, tn), index_map)

    if not multi_k:
        grid = (grid_m, grid_n)
        in_specs = [
            pl.BlockSpec((tm, tk), lambda i, j: (i, 0)),
            _w_spec(lambda i, j: (0, j)),
            pl.BlockSpec((1, tn), lambda i, j: (0, j)),
        ]
        out_spec = pl.BlockSpec((tm, tn), lambda i, j: (i, j))
        semantics = ("parallel", "parallel")
        kernel = _kernel_single_k
        scratch = []
    else:
        grid = (grid_m, grid_n, grid_k)
        in_specs = [
            pl.BlockSpec((tm, tk), lambda i, j, k: (i, k)),
            _w_spec(lambda i, j, k: (k, j)),
            pl.BlockSpec((1, tn), lambda i, j, k: (0, j)),
        ]
        out_spec = pl.BlockSpec((tm, tn), lambda i, j, k: (i, j))
        semantics = ("parallel", "parallel", "arbitrary")
        if out_dtype == jnp.dtype(jnp.float32):
            kernel = _kernel_multi_k_inplace   # output block doubles as accumulator
            scratch = []
        else:
            kernel = _kernel_multi_k_scratch
            scratch = [pltpu.VMEM((tm, tn), jnp.float32)]

    out = pl.pallas_call(
        kernel,
        out_shape=jax.ShapeDtypeStruct((Mp, Np), out_dtype),
        grid_spec=pltpu.PrefetchScalarGridSpec(
            num_scalar_prefetch=0,
            grid=grid,
            in_specs=in_specs,
            out_specs=out_spec,
            scratch_shapes=scratch,
        ),
        compiler_params=pltpu.CompilerParams(
            dimension_semantics=semantics,
            vmem_limit_bytes=_VMEM_LIMIT,
        ),
    )(xc, wc, bc)

    if (Mp, Np) != (M, N):
        out = out[:M, :N]
    return out


def _ref_forward(x, w, b):
    return jnp.maximum(x @ w + b[None, :], 0.0)


if __name__ == "__main__":
    key = jax.random.PRNGKey(0)

    # --- Small shapes consistent with the module (batch=8, in=32, out=64) ----
    batch, input_dim, output_dim = 8, 32, 64
    kx, kw, kb, k2 = jax.random.split(key, 4)

    x = jax.random.normal(kx, (batch, input_dim), dtype=jnp.float32)
    bound = 1.0 / (input_dim ** 0.5)        # nn.Linear default init range
    w_pt = jax.random.uniform(kw, (output_dim, input_dim),
                              minval=-bound, maxval=bound, dtype=jnp.float32)
    b = jax.random.uniform(kb, (output_dim,),
                           minval=-bound, maxval=bound, dtype=jnp.float32)
    w = w_pt.T                               # (input_dim, output_dim), done once

    y = bridge_layer(x, w, b)
    jax.block_until_ready(y)
    y_ref = _ref_forward(x, w, b)
    assert y.shape == (batch, output_dim)
    assert y.dtype == x.dtype
    assert jnp.allclose(y, y_ref, atol=1e-2, rtol=1e-2), "small-shape mismatch"

    # --- Larger case: single-K-step path, tiles = divisors of aligned dims ---
    M2, K2, N2 = 256, 640, 384
    ka, kb2, kc = jax.random.split(k2, 3)
    x2 = jax.random.normal(ka, (M2, K2), dtype=jnp.float32)
    w2 = jax.random.normal(kb2, (K2, N2), dtype=jnp.float32) * (K2 ** -0.5)
    b2 = jax.random.normal(kc, (N2,), dtype=jnp.float32) * 0.1
    y2_ref = _ref_forward(x2, w2, b2)

    y2 = bridge_layer(x2, w2, b2)            # whole K in one grid step
    jax.block_until_ready(y2)
    assert jnp.allclose(y2, y2_ref, atol=1e-2, rtol=1e-2), "single-K mismatch"

    # --- Multi-K reduction, f32 output accumulated in-place in the out block --
    y2_mk = bridge_layer(x2, w2, b2, tk=128)
    jax.block_until_ready(y2_mk)
    assert jnp.allclose(y2_mk, y2_ref, atol=1e-2, rtol=1e-2), "multi-K mismatch"

    # --- bf16 inputs + bf16 output (scratch accumulator path) ----------------
    y2_bf16 = bridge_layer(x2, w2, b2, compute_dtype=jnp.bfloat16,
                           out_dtype=jnp.bfloat16, tk=128)
    jax.block_until_ready(y2_bf16)
    assert y2_bf16.dtype == jnp.bfloat16
    assert jnp.allclose(y2_bf16.astype(jnp.float32), y2_ref,
                        atol=6e-2, rtol=6e-2), "bf16 mismatch"

    print("KERNEL_OK")
</pallas_src>

<mosaic_0001>
module attributes {stable_mosaic.version = 11 : i64} {
  func.func @_kernel_single_k(%arg0: i32, %arg1: i32, %arg2: memref<8x128xf32, #tpu.memory_space<vmem>>, %arg3: memref<128x128xf32, #tpu.memory_space<vmem>>, %arg4: memref<1x128xf32, #tpu.memory_space<vmem>>, %arg5: memref<8x128xf32, #tpu.memory_space<vmem>>) attributes {dimension_semantics = [#tpu.dimension_semantics<parallel>, #tpu.dimension_semantics<parallel>], iteration_bounds = array<i64: 1, 1>, scalar_prefetch = 0 : i64, scratch_operands = 0 : i64, tpu.core_type = #tpu.core_type<tc>, window_params = [{transform_indices = @transform_0, window_bounds = array<i64: 8, 128>}, {transform_indices = @transform_1, window_bounds = array<i64: 128, 128>}, {transform_indices = @transform_2, window_bounds = array<i64: 1, 128>}, {transform_indices = @transform_3, window_bounds = array<i64: 8, 128>}]} {
    %c0 = arith.constant 0 : index
    %c0_0 = arith.constant 0 : index
    %0 = vector.load %arg2[%c0, %c0_0] : memref<8x128xf32, #tpu.memory_space<vmem>>, vector<8x128xf32>
    %c0_1 = arith.constant 0 : index
    %c0_2 = arith.constant 0 : index
    %1 = vector.load %arg3[%c0_1, %c0_2] : memref<128x128xf32, #tpu.memory_space<vmem>>, vector<128x128xf32>
    %cst = arith.constant dense<0.000000e+00> : vector<8x128xf32>
    %2 = tpu.matmul %0, %1, %cst {dimension_numbers = #tpu.dot_dimension_numbers<[1], [0], [0], [1], [0, 0, 1, 1], [], []>} : vector<8x128xf32>, vector<128x128xf32>, vector<8x128xf32> -> vector<8x128xf32>
    %c0_3 = arith.constant 0 : index
    %c0_4 = arith.constant 0 : index
    %3 = vector.load %arg4[%c0_3, %c0_4] : memref<1x128xf32, #tpu.memory_space<vmem>>, vector<1x128xf32>
    %4 = vector.broadcast %3 : vector<1x128xf32> to vector<8x128xf32>
    %5 = arith.addf %2, %4 : vector<8x128xf32>
    %cst_5 = arith.constant 0.000000e+00 : f32
    %6 = vector.broadcast %cst_5 : f32 to vector<8x128xf32>
    %7 = arith.maximumf %5, %6 : vector<8x128xf32>
    %c0_6 = arith.constant 0 : index
    %c0_7 = arith.constant 0 : index
    %8 = vector.load %arg5[%c0_6, %c0_7] : memref<8x128xf32, #tpu.memory_space<vmem>>, vector<8x128xf32>
    tpu.vector_store %arg5[%c0_6, %c0_7], %7 {strides = array<i32>} : memref<8x128xf32, #tpu.memory_space<vmem>>, vector<8x128xf32>,
    return
  }
  func.func @transform_0(%arg0: i32, %arg1: i32) -> (i32, i32) {
    %c0_i32 = arith.constant 0 : i32
    %c0_i32_0 = arith.constant 0 : i32
    return %arg0, %c0_i32 : i32, i32
  }
  func.func @transform_1(%arg0: i32, %arg1: i32) -> (i32, i32) {
    %c0_i32 = arith.constant 0 : i32
    %c0_i32_0 = arith.constant 0 : i32
    return %c0_i32, %arg1 : i32, i32
  }
  func.func @transform_2(%arg0: i32, %arg1: i32) -> (i32, i32) {
    %c0_i32 = arith.constant 0 : i32
    %c0_i32_0 = arith.constant 0 : i32
    return %c0_i32, %arg1 : i32, i32
  }
  func.func @transform_3(%arg0: i32, %arg1: i32) -> (i32, i32) {
    %c0_i32 = arith.constant 0 : i32
    return %arg0, %arg1 : i32, i32
  }
}

</mosaic_0001>

<bundles_post_ra>
// kernel: bridge_layer.1
= control target key start
LH: loop header
LB: loop body
LE: loop exit
PB: predicated region body
PF: predicated region fallthrough
CT: control target
= control target key end

     0   :  { %v230_v3 = vmov 0.0|0.0   ;;  %vm231_vm0 = vmmov 0   ;;  %v232_v6 = vmov 0.0   ;;  %s320_s0 = inlined_call_operand.vmem [shape: f32[8,128], index: 0, kind: input, shape index: {}]   ;;  %s321_s1 = inlined_call_operand.vmem [shape: f32[128,128], index: 1, kind: input, shape index: {}]   ;;  %s322_s2 = inlined_call_operand.vmem [shape: f32[1,128], index: 2, kind: input, shape index: {}]   ;;  %s323_s3 = inlined_call_operand.hbm [shape: f32[8,128], index: 3, kind: output, shape index: {}]  }
   0x1   :  { %v16_v0 = vld [vmem:[%s321_s1] sm:$0xff]  ;;  %v17_v1 = vld [vmem:[%s321_s1 + $0x8] sm:$0xff]  ;;  %v18_v2 = vld [vmem:[%s321_s1 + $0x10] sm:$0xff]  ;;  %178 = vmatprep.subr.bf16.mxu0 %v230_v3  ;;  %175 = vmatprep.mubr.msk.f32.mxu0 %vm231_vm0, %v232_v6 }
   0x2   :  { %v179_v4 = vpack.c.bf16 %v17_v1, %v16_v0  ;;  %v19_v5 = vld [vmem:[%s321_s1 + $0x18] sm:$0xff]  ;;  %v20_v8 = vld [vmem:[%s321_s1 + $0x20] sm:$0xff]  ;;  %v21_v9 = vld [vmem:[%s321_s1 + $0x28] sm:$0xff] }
   0x3   :  { %v182_v7 = vpack.c.bf16 %v19_v5, %v18_v2 }
   0x4   :  { %180 = vmatpush3.bf16.msra.mxu0 %v179_v4 }
   0x5   :  { %181 = vmatprep.subr.bf16.mxu0 %v230_v3 }
   0x6   :  { %8 = vsyncpa [#allocation3], 0  ;;  %v185_v10 = vpack.c.bf16 %v21_v9, %v20_v8  ;;  %v22_v11 = vld [vmem:[%s321_s1 + $0x30] sm:$0xff]  ;;  %v23_v12 = vld [vmem:[%s321_s1 + $0x38] sm:$0xff]  ;;  %s233_s21 = smov [#allocation2]  }
   0x7   :  { %v188_v13 = vpack.c.bf16 %v23_v12, %v22_v11  ;;  %v24_v14 = vld [vmem:[%s321_s1 + $0x40] sm:$0xff]  ;;  %v25_v15 = vld [vmem:[%s321_s1 + $0x48] sm:$0xff]  ;;  %v26_v17 = vld [vmem:[%s321_s1 + $0x50] sm:$0xff]  ;;  %s117_s22 = sshll.u32 %s233_s21, 4  ;;  %s118_s22 = int_to_ptr.vmem [resolvable:$true] %s117_s22 }
   0x8   :  { %183 = vmatpush3.bf16.msra.mxu0 %v182_v7  ;;  %v191_v16 = vpack.c.bf16 %v25_v15, %v24_v14  ;;  %v27_v18 = vld [vmem:[%s321_s1 + $0x58] sm:$0xff]  ;;  %v28_v20 = vld [vmem:[%s321_s1 + $0x60] sm:$0xff]  ;;  %v29_v21 = vld [vmem:[%s321_s1 + $0x68] sm:$0xff]  ;;  %p211_p1 = scmp.lt.s32.totalorder %s118_s22, %s118_s22 }
   0x9   :  { %184 = vmatprep.subr.bf16.mxu0 %v230_v3  ;;  %v194_v19 = vpack.c.bf16 %v27_v18, %v26_v17  ;;  %v197_v22 = vpack.c.bf16 %v29_v21, %v28_v20  ;;  %v30_v23 = vld [vmem:[%s321_s1 + $0x70] sm:$0xff]  ;;  %v31_v24 = vld [vmem:[%s321_s1 + $0x78] sm:$0xff]  ;;  %v15_v26 = vld [vmem:[%s320_s0] sm:$0xff]  ;;  %s206_s1 = scalar_lea.vmem %s118_s22, 128 }
   0xa   :  { %v200_v25 = vpack.c.bf16 %v31_v24, %v30_v23  ;;  %v125_v27 = vld [vmem:[%s322_s2] ss:$0 sm:$0xff]  ;;  %p207_p0 = scmp.ne.s32.totalorder %s118_s22, %s206_s1  ;;  %p212_p2 = scmp.lt.s32.totalorder %s206_s1, %s206_s1 }
   0xc   :  { %186 = vmatpush3.bf16.msra.mxu0 %v185_v10  ;;  %p213_p3 = por %p212_p2, %p211_p1 }
   0xd   :  { %187 = vmatprep.subr.bf16.mxu0 %v230_v3 }
   0xe   :  { %p214_p4 = pnand %p213_p3, %p207_p0 }
  0x10   :  { %189 = vmatpush3.bf16.msra.mxu0 %v188_v13 }
  0x11   :  { %190 = vmatprep.subr.bf16.mxu0 %v230_v3 }
  0x14   :  { %192 = vmatpush3.bf16.msra.mxu0 %v191_v16 }
  0x15   :  { %193 = vmatprep.subr.bf16.mxu0 %v230_v3 }
  0x18   :  { %195 = vmatpush3.bf16.msra.mxu0 %v194_v19 }
  0x19   :  { %196 = vmatprep.subr.bf16.mxu0 %v230_v3 }
  0x1c   :  { %198 = vmatpush3.bf16.msra.mxu0 %v197_v22 }
  0x1d   :  { %199 = vmatprep.subr.bf16.mxu0 %v230_v3 }
  0x20   :  { %201 = vmatpush3.bf16.msra.mxu0 %v200_v25 }
  0x23   :  { %176 = vmatmul.mubr.f32.vlgmr.msra.gmra.mrb[0].mxu0 %v15_v26 }
  0xf6   :  { %v105_v28 = vpop.f32.mrb[0].mxu0 }
  0xf7   :  { %v106_v29 = vadd.f32 %v125_v27, %v105_v28  ;;  %v177_v30 = vpop.f32.mrb[1].mxu0 }
  0xf9   :  { %v109_v31 = vmax.f32 %v106_v29, 0.0 }
  0xfb   :  { %110 = vst [vmem:[#allocation2] sm:$0xff] %v109_v31 }
  0xfc   :  { %217 = shalt.err (!%p214_p4)
}
  0xfd   :  { %s218_s24 = scalar_lea.hbm %s323_s3, 128 }
  0xfe   :  { %p219_p5 = scmp.ne.s32.totalorder %s323_s3, %s218_s24  ;;  %p222_p6 = scmp.lt.u32.totalorder %s218_s24, %s323_s3 }
 0x100   :  { %p224_p7 = pnand %p222_p6, %p219_p5 }
 0x102   :  { %227 = shalt.err (!%p224_p7)
}
 0x103   :  { %120 = dma.vmem_to_hbm [thread:$0]  %s118_s22, 128, %s323_s3, [#allocation3]  }
 0x104   :  { %228 = dma.done.wait [#allocation3], 128  }
 0x105   :  { %229 = vsyncadd [#allocation3], 4294967168 }
 0x106   :  { %124 = vsyncpa [#allocation3], 1 }

</bundles_post_ra>
